<compile_context>
chip_gen: v7x
topology: tpu7x:2x2x1
jax: 0.10.0
libtpu: 0.0.40
codegen_flags: <defaults>
</compile_context>

<pallas_src>
import functools

import jax
import jax.numpy as jnp
from jax.experimental import pallas as pl
from jax.experimental.pallas import tpu as pltpu


def agn_kernel(sw_ref, p_ref, x_ref, o_ref, *, eps, n):
    """One grid step == one (sample, group) tile.

    sw_ref: (2,)            SMEM  select_weight_ (gumbel-softmax output)
    p_ref : (1, 4, cpg, 1)  VMEM  stacked [running_mean, running_var, weight,
                                  bias] slice for this group
    x_ref : (1, 1, cpg, HW) VMEM  input tile
    o_ref : (1, 1, cpg, HW) VMEM  output tile
    """
    sw0 = sw_ref[0]
    sw1 = sw_ref[1]

    x = x_ref[0, 0].astype(jnp.float32)              # (cpg, HW)

    # One-pass group statistics: sum and sum of squares (single data sweep).
    s = jnp.sum(x)
    ssq = jnp.sum(x * x)
    mean_gn = s / n
    # torch.Tensor.var default is unbiased (divide by n-1).
    var_gn = (ssq - n * mean_gn * mean_gn) / (n - 1.0)

    rm = p_ref[0, 0]                                  # (cpg, 1) running_mean
    rv = p_ref[0, 1]                                  # (cpg, 1) running_var
    w = p_ref[0, 2]                                   # (cpg, 1) weight
    b = p_ref[0, 3]                                   # (cpg, 1) bias

    m = sw0 * mean_gn + sw1 * rm                      # (cpg, 1)
    v = sw0 * var_gn + sw1 * rv                       # (cpg, 1)

    # Fused normalize + affine: y = x * scale + shift  (rsqrt -> EUP slot).
    scale = w * jax.lax.rsqrt(v + eps)                # (cpg, 1)
    shift = b - m * scale                             # (cpg, 1)

    o_ref[0, 0] = (x * scale + shift).astype(o_ref.dtype)


def agn_forward(x, weight, bias, running_mean, running_var, select_weight_,
                num_groups, eps=1e-5):
    """x: (N, C, H, W).  Per-channel params are flat (C,)."""
    N, C, H, W = x.shape
    G = num_groups
    assert C % G == 0
    cpg = C // G
    HW = H * W
    assert cpg * HW > 1, "unbiased variance needs more than one element/group"

    x4 = x.reshape(N, G, cpg, HW)

    # Stack the four per-channel parameter vectors -> one DMA per grid step.
    params = jnp.stack(
        [running_mean.astype(jnp.float32),
         running_var.astype(jnp.float32),
         weight.astype(jnp.float32),
         bias.astype(jnp.float32)],
        axis=0,                                       # (4, C)
    ).reshape(4, G, cpg, 1).transpose(1, 0, 2, 3)     # (G, 4, cpg, 1)
    sw = select_weight_.astype(jnp.float32)

    kernel = functools.partial(agn_kernel, eps=float(eps), n=float(cpg * HW))

    # Grid ordered (G outer, N inner): parameter block index is constant over
    # the inner sweep so Pallas skips redundant parameter DMAs.
    param_spec = pl.BlockSpec((1, 4, cpg, 1), lambda g, i: (g, 0, 0, 0))
    tile_spec = pl.BlockSpec((1, 1, cpg, HW), lambda g, i: (i, g, 0, 0))

    out = pl.pallas_call(
        kernel,
        out_shape=jax.ShapeDtypeStruct((N, G, cpg, HW), x.dtype),
        grid=(G, N),
        in_specs=[
            pl.BlockSpec(memory_space=pltpu.MemorySpace.SMEM),  # select_weight_
            param_spec,                                         # stacked params
            tile_spec,                                          # x
        ],
        out_specs=tile_spec,
        compiler_params=pltpu.CompilerParams(
            dimension_semantics=("parallel", "parallel")),
    )(sw, params, x4)

    return out.reshape(N, C, H, W)


def gumbel_softmax(key, logits, tau):
    """F.gumbel_softmax(logits, tau, hard=False) equivalent (soft)."""
    g = jax.random.gumbel(key, logits.shape, dtype=logits.dtype)
    return jax.nn.softmax((logits + g) / tau)


def agn_reference(x, weight, bias, rm, rv, sw, num_groups, eps):
    """Pure-JAX reference mirroring AGN.forward (eval mode, fixed == 0)."""
    N, C, H, W = x.shape
    G = num_groups
    x3 = x.reshape(N, C, -1)
    x_group = x.reshape(1, N * G, -1)
    mean_gn = x_group.mean(-1, keepdims=True)
    var_gn = x_group.var(-1, ddof=1, keepdims=True)
    mean_gn = jnp.repeat(mean_gn.reshape(N, G, 1), C // G, axis=1).reshape(N, C, 1)
    var_gn = jnp.repeat(var_gn.reshape(N, G, 1), C // G, axis=1).reshape(N, C, 1)
    mean_bn = rm.reshape(1, C, 1)
    var_bn = rv.reshape(1, C, 1)
    mean = sw[0] * mean_gn + sw[1] * mean_bn
    var = sw[0] * var_gn + sw[1] * var_bn
    xn = (x3 - mean) / jnp.sqrt(var + eps)
    xn = xn.reshape(N, C, H, W)
    return xn * weight.reshape(1, C, 1, 1) + bias.reshape(1, C, 1, 1)


if __name__ == "__main__":
    key = jax.random.PRNGKey(0)
    k_x, k_g = jax.random.split(key)

    # Small shapes consistent with the module: N=2, C=4, H=W=16, num_groups=2.
    N, C, H, W = 2, 4, 16, 16
    G = 2
    eps = 1e-5
    temperature = 0.001

    x = jax.random.normal(k_x, (N, C, H, W), dtype=jnp.float32)

    # Parameters per AGN.__init__ / reset_parameters (stored flat per-channel):
    weight = jnp.ones((C,), jnp.float32)         # nn.Parameter(torch.ones(1,C,1,1))
    bias = jnp.zeros((C,), jnp.float32)          # nn.Parameter(torch.zeros(1,C,1,1))
    running_mean = jnp.zeros((C,), jnp.float32)  # buffer (1,C,1) zeroed
    running_var = jnp.zeros((C,), jnp.float32)   # buffer (1,C,1) zeroed
    select_weight = jnp.ones((2,), jnp.float32)  # nn.Parameter(torch.ones(2))

    # fixed == 0 path: select_weight_ = gumbel_softmax(select_weight, temperature)
    select_weight_ = gumbel_softmax(k_g, select_weight, temperature)

    out = agn_forward(x, weight, bias, running_mean, running_var,
                      select_weight_, G, eps)
    out = jax.block_until_ready(out)

    ref = agn_reference(x, weight, bias, running_mean, running_var,
                        select_weight_, G, eps)

    assert out.shape == (N, C, H, W)
    assert jnp.allclose(out, ref, rtol=1e-4, atol=1e-3), (
        float(jnp.max(jnp.abs(out - ref))))
    print("KERNEL_OK")
</pallas_src>

<mosaic_0001>
module attributes {stable_mosaic.version = 11 : i64} {
  func.func @agn_kernel(%arg0: i32, %arg1: i32, %arg2: memref<2xf32, #tpu.memory_space<smem>>, %arg3: memref<1x4x2x1xf32, #tpu.memory_space<vmem>>, %arg4: memref<1x1x2x256xf32, #tpu.memory_space<vmem>>, %arg5: memref<1x1x2x256xf32, #tpu.memory_space<vmem>>) attributes {dimension_semantics = [#tpu.dimension_semantics<parallel>, #tpu.dimension_semantics<parallel>], iteration_bounds = array<i64: 2, 2>, scalar_prefetch = 0 : i64, scratch_operands = 0 : i64, tpu.core_type = #tpu.core_type<tc>, window_params = [{transform_indices = @transform_0, window_bounds = array<i64: 2>}, {transform_indices = @transform_1, window_bounds = array<i64: 1, 4, 2, 1>}, {transform_indices = @transform_2, window_bounds = array<i64: 1, 1, 2, 256>}, {transform_indices = @transform_3, window_bounds = array<i64: 1, 1, 2, 256>}]} {
    %c0 = arith.constant 0 : index
    %0 = memref.load %arg2[%c0] : memref<2xf32, #tpu.memory_space<smem>>
    %c1 = arith.constant 1 : index
    %1 = memref.load %arg2[%c1] : memref<2xf32, #tpu.memory_space<smem>>
    %c0_0 = arith.constant 0 : index
    %c0_1 = arith.constant 0 : index
    %c0_2 = arith.constant 0 : index
    %c0_3 = arith.constant 0 : index
    %2 = vector.load %arg4[%c0_0, %c0_1, %c0_2, %c0_3] : memref<1x1x2x256xf32, #tpu.memory_space<vmem>>, vector<1x1x2x256xf32>
    %3 = vector.shape_cast %2 : vector<1x1x2x256xf32> to vector<2x256xf32>
    %4 = vector.shape_cast %3 : vector<2x256xf32> to vector<1x2x256xf32>
    %cst = arith.constant dense<0.000000e+00> : vector<1xf32>
    %5 = vector.multi_reduction <add>, %4, %cst [1, 2] : vector<1x2x256xf32> to vector<1xf32>
    %6 = vector.shape_cast %5 : vector<1xf32> to vector<1x1x1xf32>
    %7 = vector.extract %6[0, 0, 0] : f32 from vector<1x1x1xf32>
    %8 = arith.mulf %3, %3 : vector<2x256xf32>
    %9 = vector.shape_cast %8 : vector<2x256xf32> to vector<1x2x256xf32>
    %cst_4 = arith.constant dense<0.000000e+00> : vector<1xf32>
    %10 = vector.multi_reduction <add>, %9, %cst_4 [1, 2] : vector<1x2x256xf32> to vector<1xf32>
    %11 = vector.shape_cast %10 : vector<1xf32> to vector<1x1x1xf32>
    %12 = vector.extract %11[0, 0, 0] : f32 from vector<1x1x1xf32>
    %cst_5 = arith.constant 5.120000e+02 : f32
    %13 = arith.divf %7, %cst_5 : f32
    %cst_6 = arith.constant 5.120000e+02 : f32
    %14 = arith.mulf %cst_6, %13 : f32
    %15 = arith.mulf %14, %13 : f32
    %16 = arith.subf %12, %15 : f32
    %cst_7 = arith.constant 5.110000e+02 : f32
    %17 = arith.divf %16, %cst_7 : f32
    %c0_8 = arith.constant 0 : index
    %c0_9 = arith.constant 0 : index
    %c0_10 = arith.constant 0 : index
    %c0_11 = arith.constant 0 : index
    %18 = vector.load %arg3[%c0_8, %c0_9, %c0_10, %c0_11] : memref<1x4x2x1xf32, #tpu.memory_space<vmem>>, vector<1x1x2x1xf32>
    %19 = vector.shape_cast %18 : vector<1x1x2x1xf32> to vector<2x1xf32>
    %c0_12 = arith.constant 0 : index
    %c1_13 = arith.constant 1 : index
    %c0_14 = arith.constant 0 : index
    %c0_15 = arith.constant 0 : index
    %20 = vector.load %arg3[%c0_12, %c1_13, %c0_14, %c0_15] : memref<1x4x2x1xf32, #tpu.memory_space<vmem>>, vector<1x1x2x1xf32>
    %21 = vector.shape_cast %20 : vector<1x1x2x1xf32> to vector<2x1xf32>
    %c0_16 = arith.constant 0 : index
    %c2 = arith.constant 2 : index
    %c0_17 = arith.constant 0 : index
    %c0_18 = arith.constant 0 : index
    %22 = vector.load %arg3[%c0_16, %c2, %c0_17, %c0_18] : memref<1x4x2x1xf32, #tpu.memory_space<vmem>>, vector<1x1x2x1xf32>
    %23 = vector.shape_cast %22 : vector<1x1x2x1xf32> to vector<2x1xf32>
    %c0_19 = arith.constant 0 : index
    %c3 = arith.constant 3 : index
    %c0_20 = arith.constant 0 : index
    %c0_21 = arith.constant 0 : index
    %24 = vector.load %arg3[%c0_19, %c3, %c0_20, %c0_21] : memref<1x4x2x1xf32, #tpu.memory_space<vmem>>, vector<1x1x2x1xf32>
    %25 = vector.shape_cast %24 : vector<1x1x2x1xf32> to vector<2x1xf32>
    %26 = arith.mulf %0, %13 : f32
    %27 = vector.broadcast %1 : f32 to vector<2x1xf32>
    %28 = arith.mulf %27, %19 : vector<2x1xf32>
    %29 = vector.broadcast %26 : f32 to vector<2x1xf32>
    %30 = arith.addf %29, %28 : vector<2x1xf32>
    %31 = arith.mulf %0, %17 : f32
    %32 = vector.broadcast %1 : f32 to vector<2x1xf32>
    %33 = arith.mulf %32, %21 : vector<2x1xf32>
    %34 = vector.broadcast %31 : f32 to vector<2x1xf32>
    %35 = arith.addf %34, %33 : vector<2x1xf32>
    %cst_22 = arith.constant 9.99999974E-6 : f32
    %36 = vector.broadcast %cst_22 : f32 to vector<2x1xf32>
    %37 = arith.addf %35, %36 : vector<2x1xf32>
    %38 = math.rsqrt %37 : vector<2x1xf32>
    %39 = arith.mulf %23, %38 : vector<2x1xf32>
    %40 = arith.mulf %30, %39 : vector<2x1xf32>
    %41 = arith.subf %25, %40 : vector<2x1xf32>
    %42 = vector.broadcast %39 : vector<2x1xf32> to vector<2x256xf32>
    %43 = arith.mulf %3, %42 : vector<2x256xf32>
    %44 = vector.broadcast %41 : vector<2x1xf32> to vector<2x256xf32>
    %45 = arith.addf %43, %44 : vector<2x256xf32>
    %c0_23 = arith.constant 0 : index
    %c0_24 = arith.constant 0 : index
    %c0_25 = arith.constant 0 : index
    %c0_26 = arith.constant 0 : index
    %46 = vector.load %arg5[%c0_23, %c0_24, %c0_25, %c0_26] : memref<1x1x2x256xf32, #tpu.memory_space<vmem>>, vector<1x1x2x256xf32>
    %47 = vector.shape_cast %46 : vector<1x1x2x256xf32> to vector<2x256xf32>
    %48 = vector.shape_cast %45 : vector<2x256xf32> to vector<1x1x2x256xf32>
    tpu.vector_store %arg5[%c0_23, %c0_24, %c0_25, %c0_26], %48 {strides = array<i32>} : memref<1x1x2x256xf32, #tpu.memory_space<vmem>>, vector<1x1x2x256xf32>,
    return
  }
  func.func @transform_0(%arg0: i32, %arg1: i32) -> i32 {
    %c0_i32 = arith.constant 0 : i32
    %c0_i32_0 = arith.constant 0 : i32
    return %c0_i32 : i32
  }
  func.func @transform_1(%arg0: i32, %arg1: i32) -> (i32, i32, i32, i32) {
    %c0_i32 = arith.constant 0 : i32
    %c0_i32_0 = arith.constant 0 : i32
    %c0_i32_1 = arith.constant 0 : i32
    %c0_i32_2 = arith.constant 0 : i32
    return %arg0, %c0_i32, %c0_i32_0, %c0_i32_1 : i32, i32, i32, i32
  }
  func.func @transform_2(%arg0: i32, %arg1: i32) -> (i32, i32, i32, i32) {
    %c0_i32 = arith.constant 0 : i32
    %c0_i32_0 = arith.constant 0 : i32
    %c0_i32_1 = arith.constant 0 : i32
    return %arg1, %arg0, %c0_i32, %c0_i32_0 : i32, i32, i32, i32
  }
  func.func @transform_3(%arg0: i32, %arg1: i32) -> (i32, i32, i32, i32) {
    %c0_i32 = arith.constant 0 : i32
    %c0_i32_0 = arith.constant 0 : i32
    %c0_i32_1 = arith.constant 0 : i32
    return %arg1, %arg0, %c0_i32, %c0_i32_0 : i32, i32, i32, i32
  }
}

</mosaic_0001>

<bundles_post_ra>
// kernel: tpu_custom_call.1
= control target key start
LH: loop header
LB: loop body
LE: loop exit
PB: predicated region body
PF: predicated region fallthrough
CT: control target
= control target key end

     0   :  { %s894_s0 = inlined_call_operand.vmem [shape: f32[2], index: 0, kind: input, shape index: {}]   ;;  %s895_s1 = inlined_call_operand.vmem [shape: f32[2,4,2,1], index: 1, kind: input, shape index: {}]   ;;  %s896_s2 = inlined_call_operand.vmem [shape: f32[2,2,2,256], index: 2, kind: input, shape index: {}]   ;;  %s897_s3 = inlined_call_operand.hbm [shape: f32[2,2,2,256], index: 3, kind: output, shape index: {}]  }
   0x1   :  { %898 = sst [smem:[#allocation8_spill]] %s894_s0 }
   0x2   :  { %8 = vsyncpa [#allocation4], 0 }
   0x3   :  { %9 = vsyncpa [#allocation3], 0 }
   0x4   :  { %11 = vsyncpa [#allocation3 + $0x1], 0  ;;  %s719_s12 = smov 0   ;;  %s721_s13 = smov 0  }
   0x5   :  { %s723_s14 = smov 0   ;;  %s725_s15 = smov 0  }
   0x6   :  { %s727_s16 = smov 0   ;;  %s729_s17 = smov 0  }
   0x7   :  { %s731_s18 = smov 0   ;;  %s733_s19 = smov 0  }
   0x8 LB: > { %s462_s20 = sadd.s32 4294967295, %s692_s19   ;;  %s463_s21 = sadd.s32 4294967294, %s692_s19   ;;  %s692_s19 = sphi %s733_s19, %s17_s19   ;;  %s688_s18 = sphi %s731_s18, %s911_s18   ;;  %s684_s17 = sphi %s729_s17, %s910_s17   ;;  %s680_s16 = sphi %s727_s16, %s909_s16   ;;  %s676_s15 = sphi %s725_s15, %s908_s15   ;;  %s672_s14 = sphi %s723_s14, %s907_s14   ;;  %s668_s13 = sphi %s721_s13, %s906_s13   ;;  %s664_s12 = sphi %s719_s12, %s905_s12  }
   0x9   : > { %s26_s22 = sadd.s32 1, %s684_s17  ;;  %s29_s23 = sadd.s32 1, %s688_s18 }
   0xa   : > { %p27_p0 = scmp.ge.s32.totalorder %s26_s22, 2  ;;  %s113_s24 = sadd.s32 1, %s672_s14 }
   0xb   : > { %p123_p1 = scmp.ne.s32.totalorder %s672_s14, %s668_s13  ;;  %p124_p2 = scmp.eq.s32.totalorder %s462_s20, 3 }
   0xc   : > { %s913_s22 = smov (%p27_p0, %s26_s22), 0  ;;  %s915_s23 = smov (!%p27_p0, %s29_s23), %s688_s18 }
   0xd   : > { %s108_s25 = ssub.s32 %s684_s17, %s913_s22  ;;  %p771_p3 = por %p124_p2, %p123_p1 }
   0xe   : > { %p31_p4 = scmp.ge.s32.totalorder %s915_s23, 2  ;;  %p129_p5 = scmp.ne.s32.totalorder %s668_s13, %s664_s12 }
   0xf   : > { %p130_p6 = scmp.eq.s32.totalorder %s463_s21, 3  ;;  %p464_p7 = scmp.ge.s32.totalorder %s692_s19, 1 }
  0x10   : > { %s917_s23 = smov (%p31_p4, %s915_s23), 0  ;;  %p137_p9 = scmp.lt.s32.totalorder %s692_s19, 5 }
  0x11   : > { %p780_p8 = por %p130_p6, %p129_p5  ;;  %s109_s28 = ssub.s32 %s688_s18, %s917_s23 }
  0x12   : > { %s110_s29 = sor.u32 %s109_s28, %s108_s25  ;;  %p787_p10 = pnand %p464_p7, %p137_p9 }
  0x13   : > { %s900_s27 = scalar_select %p780_p8, 1, 0 }
  0x14   : > { %p111_p11 = scmp.eq.s32.totalorder %s110_s29, 0  ;;  %p791_p12 = scmp.eq.s32.totalorder %s462_s20, 0 }
  0x15   : > { %p496_p13 = pneg %p787_p10  ;;  %s903_s0 = sld [smem:[#allocation8_spill]] }
  0x16   : > { %s801_s8 = scalar_select %p111_p11, %s672_s14, %s113_s24  }
  0x17   : > { %p497_p0 = pnand %p791_p12, %p496_p13 }
  0x19   : > { %p581_p2 = pneg %p497_p0 }
  0x1b   : > { %s150_s7 = sshll.u32 %s903_s0, 4  ;;  %s151_s7 = int_to_ptr.vmem [resolvable:$true] %s150_s7 }
  0x1c   : > { %s579_s9 = scalar_lea.vmem %s151_s7, 16  ;;  %p587_p6 = scmp.lt.s32.totalorder %s151_s7, %s151_s7 }
  0x1d   : > { %p580_p1 = scmp.ne.s32.totalorder %s151_s7, %s579_s9  ;;  %p588_p7 = scmp.lt.s32.totalorder %s579_s9, %s579_s9 }
  0x1f   : > { %p582_p4 = pnand %p581_p2, %p580_p1  ;;  %p589_p9 = por %p588_p7, %p587_p6 }
  0x21   : > { %p583_p5 = pneg %p582_p4 }
  0x23   : > { %p590_p8 = pnand %p589_p9, %p583_p5 }
  0x25   : > { %593 = shalt.err (!%p590_p8)
}
  0x26   : > { %s694_s10 = smov [#allocation2]   ;;  %183 = sbr.rel (%p787_p10) target bundleno = 449 (0x1c1), region = 32 }
  0x27   : > { %499 = dma.vmem_to_smem (!%p497_p0), %s151_s7, 16, %s694_s10, [#allocation4]  }
  0x2d   : > { %655 = dma.done.wait (%p791_p12), [#allocation4], 16  }
  0x2e   : > { %657 = vsyncadd (%p791_p12), [#allocation4], 4294967280 }
  0x2f   : > { %189 = sfence }
  0x30   : > { %p217_p11 = scmp.lt.s32.totalorder %s680_s16, 1  ;;  %p222_p13 = scmp.lt.s32.totalorder %s676_s15, 1  ;;  %v238_v0 = vlaneseq  ;;  %v695_v1 = vmov 1983009808   ;;  %vm245_vm0 = vcmask 1041408   ;;  %v696_v18 = vmov 0  }
  0x31   : > { %v236_v2 = vunpack.c.l.s4 %v695_v1  ;;  %575 = vset.pattern.permute.xlu1 %v696_v18  ;;  %576 = vset.pattern.permute.xlu0 %v696_v18  ;;  %s475_s7 = sld [smem:[#allocation2 + $0x1]]  ;;  %v697_v49 = vmov 269488144  }
  0x32   : > { %s814_s11 = scalar_select %p217_p11, %s680_s16, 1  ;;  %v816_v3 = vshrl.u32 %v238_v0, 7  ;;  %v317_v50 = vunpack.c.l.s4 %v697_v49 }
  0x33   : > { %s223_s20 = scalar_select %p222_p13, %s676_s15, 1  ;;  %v237_v4 = vunpack.c.0.s8 %v236_v2 }
  0x34   : > { %s472_s21 = sshll.u32 %s814_s11, 1  ;;  %s485_s9 = sshll.u32 %s814_s11, 3  ;;  %v318_v51 = vunpack.c.0.s8 %v317_v50 }
  0x35   : > { %s473_s24 = sshll.u32 %s223_s20, 2  ;;  %v240_v5 = vsub.s32 %v237_v4, %v816_v3  ;;  %s231_s20 = sld [smem:[#allocation2]] }
  0x36   : > { %s228_s25 = sadd.s32 %s473_s24, %s472_s21  ;;  %v321_v52 = vsub.s32 %v318_v51, %v816_v3 }
  0x37   : > { %s474_s28 = sshll.u32 %s228_s25, 1  ;;  %v299_v34 = vstv %s475_s7  ;;  %s481_s7 = sshll.u32 %s676_s15, 2 }
  0x38   : > { %s230_s4 = scalar_lea.vmem %s896_s2, %s474_s28  ;;  %s221_s28 = scalar_lea.vmem %s895_s1, %s485_s9 }
  0x39   : > { %v824_v6 = vld [vmem:[%s230_s4] sm:$0xf]  ;;  %v477_v42 = vld [vmem:[%s221_s28 + $0x4] sm:$0x3]  ;;  %v478_v46 = vld [vmem:[%s221_s28 + $0x6] sm:$0x3] }
  0x3a   : > { %v241_v7 = vrot.slane %v824_v6, %v240_v5  ;;  %v258_v8 = vmul.f32 %v824_v6, %v824_v6  ;;  %v476_v33 = vld [vmem:[%s221_s28 + $0x2] sm:$0x3]  ;;  %v291_v39 = vld [vmem:[%s221_s28] sm:$0x3] }
  0x3b   : > { %v304_v35 = vmul.f32 %v476_v33, %v299_v34  ;;  %v300_v40 = vmul.f32 %v299_v34, %v291_v39 }
  0x3c   : > { %v242_v9 = vcombine.high %v241_v7, %v241_v7  ;;  %v246_v10 = vsel %vm245_vm0, %v241_v7, 0.0  ;;  %v266_v11 = vrot.slane %v258_v8, %v240_v5 }
  0x3e   : > { %v247_v12 = vsel %vm245_vm0, %v242_v9, 0.0  ;;  %v267_v13 = vcombine.high %v266_v11, %v266_v11  ;;  %v270_v14 = vsel %vm245_vm0, %v266_v11, 0.0 }
  0x3f   : > { %v248_v15 = vadd.f32 %v247_v12, %v246_v10 }
  0x40   : > { %v271_v16 = vsel %vm245_vm0, %v267_v13, 0.0 }
  0x41   : > { %249 = vadd.xlane.f32.xlu0 %v248_v15  ;;  %v272_v17 = vadd.f32 %v271_v16, %v270_v14 }
  0x45   : > { %273 = vadd.xlane.f32.xlu0 %v272_v17 }
  0xce   : > { %v250_v19 = vpop.xlane.xlu0 %249 }
  0xcf   : > { %v251_v20 = vrot.slane %v250_v19, 4 }
  0xd1   : > { %v252_v21 = vadd.f32 %v251_v20, %v250_v19 }
  0xd2   : > { %v274_v22 = vpop.xlane.xlu0 %273 }
  0xd3   : > { %v253_v23 = vrot.slane %v252_v21, 2  ;;  %v275_v24 = vrot.slane %v274_v22, 4 }
  0xd5   : > { %v276_v25 = vadd.f32 %v275_v24, %v274_v22  ;;  %v254_v26 = vadd.f32 %v253_v23, %v252_v21 }
  0xd7   : > { %v277_v27 = vrot.slane %v276_v25, 2  ;;  %v255_v28 = vrot.slane %v254_v26, 1 }
  0xd9   : > { %v278_v29 = vadd.f32 %v277_v27, %v276_v25  ;;  %v256_v30 = vadd.f32 %v255_v28, %v254_v26 }
  0xdb   : > { %486 = vpush %v256_v30  ;;  %v279_v31 = vrot.slane %v278_v29, 1 }
  0xdd   : > { %v280_v32 = vadd.f32 %v279_v31, %v278_v29 }
  0xdf   : > { %488 = vpush %v280_v32 }
 0x10c   : > { %s487_s5 = spop %486 }
 0x10d   : > { %s284_s6 = smul.f32 0.001953125, %s487_s5 }
 0x10f   : > { %s285_s10 = smul.f32 512.0, %s284_s6 }
 0x110   : > { %s489_s29 = spop %488  ;;  %s298_s5 = smul.f32 %s284_s6, %s231_s20 }
 0x111   : > { %s286_s21 = smul.f32 %s285_s10, %s284_s6  ;;  %s480_s6 = sshll.u32 %s680_s16, 1 }
 0x112   : > { %v301_v41 = vstv %s298_s5  ;;  %s352_s9 = sadd.s32 %s481_s7, %s480_s6 }
 0x113   : > { %s287_s30 = ssub.f32 %s489_s29, %s286_s21  ;;  %v302_v45 = vadd.f32 %v301_v41, %v300_v40  ;;  %s482_s10 = sshll.u32 %s352_s9, 5 }
 0x114   : > { %s841_s28 = scalar_lea.hbm %s897_s3, %s482_s10  ;;  %s698_s29 = smov [#allocation5]  }
 0x115   : > { %s290_s4 = smul.f32 0.0019569471, %s287_s30  ;;  %s598_s30 = sshll.u32 %s698_s29, 4  ;;  %s599_s30 = int_to_ptr.vmem [resolvable:$false] %s598_s30 }
 0x117   : > { %s303_s0 = smul.f32 %s290_s4, %s231_s20  ;;  %s600_s4 = scalar_lea.vmem %s599_s30, 128 }
 0x119   : > { %v305_v36 = vstv %s303_s0  ;;  %s214_s0 = sand.u32 1, %s668_s13  }
 0x11a   : > { %v306_v37 = vadd.f32 %v305_v36, %v304_v35  ;;  %s469_s11 = sshll.u32 %s214_s0, 2  ;;  %s340_s15 = scalar_lea.sflag [#allocation3], %s214_s0 }
 0x11b   : > { %s216_s20 = scalar_lea.vmem [#allocation5], %s469_s11 }
 0x11c   : > { %v307_v38 = vadd.f32 1e-05, %v306_v37  ;;  %s356_s21 = sshll.u32 %s216_s20, 4  ;;  %s843_s21 = int_to_ptr.vmem [resolvable:$true] %s356_s21 }
 0x11d   : > { %s594_s16 = scalar_lea.vmem %s843_s21, 64  ;;  %p601_p0 = scmp.lt.s32.totalorder %s843_s21, %s599_s30 }
 0x11e   : > { %577 = vrsqrt.f32 %v307_v38  ;;  %p595_p8 = scmp.ne.s32.totalorder %s843_s21, %s594_s16  ;;  %p602_p1 = scmp.lt.s32.totalorder %s600_s4, %s594_s16 }
 0x120   : > { %p596_p10 = pnand %p595_p8, %p771_p3  ;;  %p603_p2 = por %p602_p1, %p601_p0 }
 0x122   : > { %p597_p12 = pneg %p596_p10 }
 0x124   : > { %p604_p4 = pnand %p603_p2, %p597_p12 }
 0x128   : > { %v578_v43 = vpop.eup %577 }
 0x129   : > { %v309_v44 = vmul.f32 %v578_v43, %v477_v42 }
 0x12b   : > { %314 = vperm.xlu1 %575, %v309_v44   ;;  %v310_v47 = vmul.f32 %v309_v44, %v302_v45 }
 0x12d   : > { %v311_v48 = vsub.f32 %v478_v46, %v310_v47 }
 0x12f   : > { %327 = vperm.xlu1 %575, %v311_v48  }
 0x1aa   : > { %v315_v53 = vpop.permute.xlu1 %314 }
 0x1ab   : > { %v322_v54 = vrot.slane %v315_v53, %v321_v52 }
 0x1ad   : > { %v324_v56 = vmul.f32 %v322_v54, %v824_v6 }
 0x1ae   : > { %v328_v55 = vpop.permute.xlu1 %327 }
 0x1af   : > { %v335_v57 = vrot.slane %v328_v55, %v321_v52 }
 0x1b1   : > { %v337_v58 = vadd.f32 %v335_v57, %v324_v56 }
 0x1b3   : > { %338 = vst [vmem:[%s216_s20] sm:$0xf] %v337_v58 }
 0x1b4   : > { %607 = shalt.err (!%p604_p4)
}
 0x1b5   : > { %s608_s5 = scalar_lea.hbm %s841_s28, 64  ;;  %s612_s6 = scalar_lea.hbm %s897_s3, 256 }
 0x1b6   : > { %p609_p5 = scmp.ne.s32.totalorder %s841_s28, %s608_s5  ;;  %p613_p9 = scmp.lt.u32.totalorder %s841_s28, %s897_s3 }
 0x1b7   : > { %p614_p11 = scmp.lt.u32.totalorder %s612_s6, %s608_s5  ;;  %p616_p8 = scmp.lt.u32.totalorder %s608_s5, %s841_s28 }
 0x1b8   : > { %p610_p6 = pnand %p609_p5, %p771_p3 }
 0x1b9   : > { %p615_p13 = por %p614_p11, %p613_p9 }
 0x1ba   : > { %p611_p7 = pneg %p610_p6 }
 0x1bb   : > { %p617_p10 = por %p616_p8, %p615_p13 }
 0x1bd   : > { %p618_p12 = pnand %p617_p10, %p611_p7 }
 0x1bf   : > { %621 = shalt.err (!%p618_p12)
}
 0x1c0   : > { %494 = dma.vmem_to_hbm [thread:$0]  (%p771_p3), %s843_s21, 64, %s841_s28, %s340_s15  }
 0x1c1 PF: > { %p506_p0 = scmp.ge.s32.totalorder %s692_s19, 2  ;;  %s368_s10 = sand.u32 1, %s664_s12  }
 0x1c2   : > { %p904_p1 = scmp.ne.s32.totalorder %s900_s27, 0  ;;  %s369_s20 = scalar_lea.sflag [#allocation3], %s368_s10 }
 0x1c4   : > { %p501_p2 = pnand %p506_p0, %p904_p1 }
 0x1c6   : > { %659 = dma.done.wait (!%p501_p2), %s369_s20, 64  }
 0x1c7   : > { %661 = vsyncadd (!%p501_p2), %s369_s20, 4294967232  ;;  %s17_s19 = sadd.s32 1, %s692_s19   ;;  %s905_s12 = smov %s668_s13 }
 0x1c8   : > { %p14_p4 = scmp.ge.s32.totalorder %s17_s19, 6   ;;  %s906_s13 = smov %s672_s14 }
 0x1c9   : > { %s907_s14 = smov %s801_s8  ;;  %s908_s15 = smov %s684_s17 }
 0x1ca   : > { %s909_s16 = smov %s688_s18  ;;  %s910_s17 = smov %s913_s22 }
 0x1cb   : > { %s911_s18 = smov %s917_s23  ;;  %16 = sbr.rel (!%p14_p4) target bundleno = 8 (0x8), region = 78 }
 0x1d2   :  { %374 = vsyncpa [#allocation3], 1 }
 0x1d3   :  { %376 = vsyncpa [#allocation3 + $0x1], 1 }
 0x1d4   :  { %377 = vsyncpa [#allocation4], 1 }
 0x1d5   :  { %379 = vsyncpa [#allocation4 + $0x1], 1 }

</bundles_post_ra>
